<compile_context>
chip_gen: v7x
topology: tpu7x:2x2x1
jax: 0.10.0
libtpu: 0.0.40
codegen_flags: <defaults>
</compile_context>

<pallas_src>
import functools

import numpy as np

import jax
import jax.numpy as jnp
from jax import lax
from jax.experimental import pallas as pl
from jax.experimental.pallas import tpu as pltpu

BN_EPS = 1e-5


def _basic_block_kernel(x_ref, wt1_ref, wt2_ref, gb_ref, gmat_ref, gmatt_ref,
                        out_ref, *, height, inv_count):
    """Fused BasicBlock forward.  Layout: rows = H (sublanes), lanes = N*W*C.

    x_ref     : (H, N*W*C)             input rows (lane-dense, f32)
    wt1/wt2   : (3*N*W*C, N*W*C)       conv weights, 3 vertical taps stacked
                                       along K (row-Toeplitz, block-diag in N)
    gb_ref    : (4, C)                 [gamma1; beta1; gamma2; beta2]
    gmat_ref  : (N*W*C, C)             one-hot lane-column -> channel grouping
    gmatt_ref : (C, N*W*C)             its transpose (channel -> lanes bcast)
    out_ref   : (H, N*W*C)             output rows (lane-dense, unmasked vst)
    """
    x = x_ref[...]                                         # (H, lanes) f32
    gb = gb_ref[...]                                       # (4, C)       f32
    row_ids = lax.broadcasted_iota(jnp.int32, x.shape, 0)  # row index mask aid

    def conv3x3(v, wt_ref):
        # out[h] = v[h-1] @ Wt[0] + v[h] @ Wt[1] + v[h+1] @ Wt[2]
        # (rows shifted past the image are zero == the conv's zero H-padding;
        #  the 3 horizontal taps + zero W-padding are folded into Wt already).
        # Shifts: XLU roll + one-row VPU mask -- no staging stores, no
        # unaligned sublane slices.  The three tap operands are concatenated on
        # the 128-aligned lane axis so the whole conv is ONE K=3*lanes matmul
        # (MXU accumulates across taps internally; single issue / single pop).
        v_dn = jnp.where(row_ids == 0, 0.0,
                         pltpu.roll(v, shift=1, axis=0))            # v[h-1]
        v_up = jnp.where(row_ids == height - 1, 0.0,
                         pltpu.roll(v, shift=height - 1, axis=0))   # v[h+1]
        vcat = jnp.concatenate([v_dn, v, v_up], axis=-1)  # (H, 3*lanes)
        return jnp.dot(vcat.astype(wt_ref.dtype), wt_ref[...],
                       preferred_element_type=jnp.float32)          # (H, lanes)

    def bn(y, g_row, b_row, relu):
        # Training-mode BN, single pass (per-channel sum & sum-of-squares, f32).
        # Channel-group reduce and lane re-broadcast are each a single tiny MXU
        # dot (stats and affine stacked on the M axis: 2 dots per BN, not 4).
        stats = jnp.concatenate(
            [jnp.sum(y, axis=0, keepdims=True),
             jnp.sum(y * y, axis=0, keepdims=True)], axis=0)        # (2, lanes)
        ch = jnp.dot(stats, gmat_ref[...],
                     preferred_element_type=jnp.float32) * inv_count  # (2, C)
        mean = ch[0:1]                                    # E[x]      (1, C)
        var = ch[1:2] - mean * mean                       # biased batch var
        scale = g_row * lax.rsqrt(var + BN_EPS)           # (1, C)
        shift = b_row - mean * scale                      # (1, C)
        aff = jnp.dot(jnp.concatenate([scale, shift], axis=0), gmatt_ref[...],
                      preferred_element_type=jnp.float32)           # (2, lanes)
        out = y * aff[0:1] + aff[1:2]
        return jnp.maximum(out, 0.0) if relu else out

    # conv1 -> bn1 -> relu
    y1 = bn(conv3x3(x, wt1_ref), gb[0:1], gb[1:2], relu=True)
    # conv2 -> bn2
    y2 = bn(conv3x3(y1, wt2_ref), gb[2:3], gb[3:4], relu=False)
    # identity residual (stride=1, downsample=None; Cin == Cout) + final ReLU
    out_ref[...] = jnp.maximum(y2 + x, 0.0).astype(out_ref.dtype)


def _toeplitz_weights(w_oihw, batch, width, dtype):
    """OIHW 3x3 weights -> (3*N*W*Cin, N*W*Cout) stacked row-Toeplitz matrix.

    Wt[dy, n*W*Cin + u*Cin + ci, m*W*Cout + wx*Cout + co]
        = w[co, ci, dy, u - wx + 1]   if n == m and |u - wx| <= 1, else 0
    so a stride-1, pad-1 3x3 conv on rows becomes
        out_row[h] = sum_dy in_row[h + dy - 1] @ Wt[dy]
    (out-of-range horizontal taps dropped == zero W-padding).  The 3 dy taps
    are then stacked along K so the kernel does one matmul per conv.

    TODO(synk): the batch block-diagonalisation is 50% structural zeros at N=2
    and quadratic in batch -- drop it (N on the M axis) when scaling up.
    """
    cout, cin = int(w_oihw.shape[0]), int(w_oihw.shape[1])
    w_hwio = jnp.transpose(w_oihw, (2, 3, 1, 0))           # (3, 3, Cin, Cout)
    # static one-hot: P[dx, wx, u] = 1 iff u == wx + dx - 1 (valid taps only)
    p = np.zeros((3, width, width), np.float32)
    for dx in range(3):
        for wx in range(width):
            u = wx + dx - 1
            if 0 <= u < width:
                p[dx, wx, u] = 1.0
    wt = jnp.einsum("xwu,yxic->yuiwc", jnp.asarray(p), w_hwio)
    wt = wt.reshape(3, width * cin, width * cout)
    # block-diagonal over the batch (images don't mix)
    eye_n = jnp.eye(batch, dtype=jnp.float32)
    wt = jnp.einsum("nm,ykc->ynkmc", eye_n, wt)
    wt = wt.reshape(3, batch * width * cin, batch * width * cout)
    # fold the 3 vertical taps onto the contraction axis and cast for the MXU
    return wt.reshape(3 * batch * width * cin,
                      batch * width * cout).astype(dtype)


@functools.partial(jax.jit, static_argnames=("use_bf16",))
def basic_block_pallas(x_nchw, w1, g1, b1, w2, g2, b2, *, use_bf16=True):
    """x_nchw: (N, Cin, H, W) like PyTorch; w*: (Cout, Cin, 3, 3) OIHW."""
    batch, cin, height, width = x_nchw.shape
    cout = w1.shape[0]
    assert cin == cout, "identity BasicBlock requires inplanes == planes"
    lanes = batch * width * cout          # 2*16*4 = 128 for the test shape
    mm_dtype = jnp.bfloat16 if use_bf16 else jnp.float32

    # NCHW -> (H, N*W*C): H on sublanes, (n, w, c) packed onto 128-wide lanes.
    x_rows = jnp.transpose(x_nchw, (2, 0, 3, 1)).reshape(height, lanes)

    wt1 = _toeplitz_weights(w1, batch, width, mm_dtype)
    wt2 = _toeplitz_weights(w2, batch, width, mm_dtype)

    # BN params packed into one (4, C) input: one DMA instead of four.
    gb = jnp.stack([g1, b1, g2, b2], axis=0).astype(jnp.float32)

    # one-hot lane-column -> channel grouping matrices (static constants, f32
    # so BN statistics stay in f32 regardless of the MXU operand dtype)
    cols = np.arange(lanes)
    gmat = (cols[:, None] % cout == np.arange(cout)[None, :]).astype(np.float32)
    gmat_t = np.ascontiguousarray(gmat.T)

    kernel = functools.partial(
        _basic_block_kernel,
        height=int(height),
        inv_count=1.0 / float(batch * height * width),
    )
    vmem = pl.BlockSpec(memory_space=pltpu.MemorySpace.VMEM)

    out_rows = pl.pallas_call(
        kernel,
        out_shape=jax.ShapeDtypeStruct((height, lanes), jnp.float32),
        in_specs=[vmem] * 6,
        out_specs=vmem,
    )(x_rows, wt1, wt2, gb, jnp.asarray(gmat), jnp.asarray(gmat_t))

    # (H, N*W*C) -> (H, N, W, C) -> NCHW
    out = out_rows.reshape(height, batch, width, cout)
    return jnp.transpose(out, (1, 3, 0, 2))


def basic_block_reference(x_nchw, w1, g1, b1, w2, g2, b2):
    """Pure-JAX reference (lax.conv) with identical forward semantics."""
    def conv(x, w):
        return lax.conv_general_dilated(
            x, w, window_strides=(1, 1), padding=((1, 1), (1, 1)),
            dimension_numbers=("NCHW", "OIHW", "NCHW"))

    def bn(y, g, b):
        mean = jnp.mean(y, axis=(0, 2, 3), keepdims=True)
        var = jnp.mean((y - mean) ** 2, axis=(0, 2, 3), keepdims=True)
        return (y - mean) * lax.rsqrt(var + BN_EPS) * g.reshape(1, -1, 1, 1) \
            + b.reshape(1, -1, 1, 1)

    out = jnp.maximum(bn(conv(x_nchw, w1), g1, b1), 0.0)
    out = bn(conv(out, w2), g2, b2)
    return jnp.maximum(out + x_nchw, 0.0)


if __name__ == "__main__":
    # Small shapes consistent with BasicBlock(inplanes=4, planes=4, stride=1)
    N, C, H, W = 2, 4, 16, 16
    key = jax.random.PRNGKey(0)
    kx, k1, k2, kg1, kb1, kg2, kb2 = jax.random.split(key, 7)

    x = jax.random.normal(kx, (N, C, H, W), jnp.float32)
    w1 = jax.random.normal(k1, (C, C, 3, 3), jnp.float32) * 0.2
    w2 = jax.random.normal(k2, (C, C, 3, 3), jnp.float32) * 0.2
    g1 = 1.0 + 0.1 * jax.random.normal(kg1, (C,), jnp.float32)
    b1 = 0.1 * jax.random.normal(kb1, (C,), jnp.float32)
    g2 = 1.0 + 0.1 * jax.random.normal(kg2, (C,), jnp.float32)
    b2 = 0.1 * jax.random.normal(kb2, (C,), jnp.float32)

    ref = basic_block_reference(x, w1, g1, b1, w2, g2, b2)

    # f32 MXU operands: tight check against the reference.
    out_f32 = jax.block_until_ready(
        basic_block_pallas(x, w1, g1, b1, w2, g2, b2, use_bf16=False))
    assert out_f32.shape == (N, C, H, W)
    err32 = jnp.max(jnp.abs(out_f32 - ref))
    assert jnp.allclose(out_f32, ref, atol=2e-3, rtol=2e-3), \
        f"f32 path max abs err {err32}"

    # bf16 MXU operands (native MXU input path on v6e/v7x, f32 accumulate):
    # tolerance sized for bf16 operand rounding (~2^-8 relative) propagated
    # through two chained 3x3 convs + batch-norm.
    out_bf16 = jax.block_until_ready(
        basic_block_pallas(x, w1, g1, b1, w2, g2, b2, use_bf16=True))
    err16 = jnp.max(jnp.abs(out_bf16 - ref))
    assert jnp.allclose(out_bf16, ref, atol=3e-2, rtol=3e-2), \
        f"bf16 path max abs err {err16}"

    print("KERNEL_OK")
</pallas_src>

<mosaic_0001>
module attributes {stable_mosaic.version = 11 : i64} {
  func.func @_basic_block_kernel(%arg0: memref<16x128xf32, #tpu.memory_space<vmem>>, %arg1: memref<384x128xf32, #tpu.memory_space<vmem>>, %arg2: memref<384x128xf32, #tpu.memory_space<vmem>>, %arg3: memref<4x4xf32, #tpu.memory_space<vmem>>, %arg4: memref<128x4xf32, #tpu.memory_space<vmem>>, %arg5: memref<4x128xf32, #tpu.memory_space<vmem>>, %arg6: memref<16x128xf32, #tpu.memory_space<vmem>>) attributes {dimension_semantics = [], scalar_prefetch = 0 : i64, scratch_operands = 0 : i64, tpu.core_type = #tpu.core_type<tc>} {
    %c0 = arith.constant 0 : index
    %c0_0 = arith.constant 0 : index
    %0 = vector.load %arg0[%c0, %c0_0] : memref<16x128xf32, #tpu.memory_space<vmem>>, vector<16x128xf32>
    %c0_1 = arith.constant 0 : index
    %c0_2 = arith.constant 0 : index
    %1 = vector.load %arg3[%c0_1, %c0_2] : memref<4x4xf32, #tpu.memory_space<vmem>>, vector<4x4xf32>
    %2 = tpu.iota {dimensions = array<i32: 0>} : vector<16x128xi32>
    %c0_i32 = arith.constant 0 : i32
    %3 = vector.broadcast %c0_i32 : i32 to vector<16x128xi32>
    %4 = arith.cmpi eq, %2, %3 : vector<16x128xi32>
    %c1_i32 = arith.constant 1 : i32
    %5 = tpu.dynamic_rotate %0 by %c1_i32 dim 0 : vector<16x128xf32>, i32 -> vector<16x128xf32>
    %cst = arith.constant 0.000000e+00 : f32
    %6 = vector.broadcast %cst : f32 to vector<16x128xf32>
    %7 = arith.select %4, %6, %5 : vector<16x128xi1>, vector<16x128xf32>
    %c15_i32 = arith.constant 15 : i32
    %8 = vector.broadcast %c15_i32 : i32 to vector<16x128xi32>
    %9 = arith.cmpi eq, %2, %8 : vector<16x128xi32>
    %c15_i32_3 = arith.constant 15 : i32
    %10 = tpu.dynamic_rotate %0 by %c15_i32_3 dim 0 : vector<16x128xf32>, i32 -> vector<16x128xf32>
    %cst_4 = arith.constant 0.000000e+00 : f32
    %11 = vector.broadcast %cst_4 : f32 to vector<16x128xf32>
    %12 = arith.select %9, %11, %10 : vector<16x128xi1>, vector<16x128xf32>
    %13 = tpu.concatenate %7, %0, %12 in 1 : vector<16x128xf32>, vector<16x128xf32>, vector<16x128xf32> -> vector<16x384xf32>
    %c0_5 = arith.constant 0 : index
    %c0_6 = arith.constant 0 : index
    %14 = vector.load %arg1[%c0_5, %c0_6] : memref<384x128xf32, #tpu.memory_space<vmem>>, vector<384x128xf32>
    %cst_7 = arith.constant dense<0.000000e+00> : vector<16x128xf32>
    %15 = tpu.matmul %13, %14, %cst_7 {dimension_numbers = #tpu.dot_dimension_numbers<[1], [0], [0], [1], [0, 0, 1, 1], [], []>} : vector<16x384xf32>, vector<384x128xf32>, vector<16x128xf32> -> vector<16x128xf32>
    %16 = vector.extract_strided_slice %1 {offsets = [0, 0], sizes = [1, 4], strides = [1, 1]} : vector<4x4xf32> to vector<1x4xf32>
    %17 = vector.extract_strided_slice %1 {offsets = [1, 0], sizes = [1, 4], strides = [1, 1]} : vector<4x4xf32> to vector<1x4xf32>
    %cst_8 = arith.constant dense<0.000000e+00> : vector<128xf32>
    %18 = vector.multi_reduction <add>, %15, %cst_8 [0] : vector<16x128xf32> to vector<128xf32>
    %19 = vector.shape_cast %18 : vector<128xf32> to vector<1x128xf32>
    %20 = arith.mulf %15, %15 : vector<16x128xf32>
    %cst_9 = arith.constant dense<0.000000e+00> : vector<128xf32>
    %21 = vector.multi_reduction <add>, %20, %cst_9 [0] : vector<16x128xf32> to vector<128xf32>
    %22 = vector.shape_cast %21 : vector<128xf32> to vector<1x128xf32>
    %23 = tpu.concatenate %19, %22 in 0 : vector<1x128xf32>, vector<1x128xf32> -> vector<2x128xf32>
    %c0_10 = arith.constant 0 : index
    %c0_11 = arith.constant 0 : index
    %24 = vector.load %arg4[%c0_10, %c0_11] : memref<128x4xf32, #tpu.memory_space<vmem>>, vector<128x4xf32>
    %cst_12 = arith.constant dense<0.000000e+00> : vector<2x4xf32>
    %25 = tpu.matmul %23, %24, %cst_12 {dimension_numbers = #tpu.dot_dimension_numbers<[1], [0], [0], [1], [0, 0, 1, 1], [], []>} : vector<2x128xf32>, vector<128x4xf32>, vector<2x4xf32> -> vector<2x4xf32>
    %cst_13 = arith.constant 0.001953125 : f32
    %26 = vector.broadcast %cst_13 : f32 to vector<2x4xf32>
    %27 = arith.mulf %25, %26 : vector<2x4xf32>
    %28 = vector.extract_strided_slice %27 {offsets = [0, 0], sizes = [1, 4], strides = [1, 1]} : vector<2x4xf32> to vector<1x4xf32>
    %29 = vector.extract_strided_slice %27 {offsets = [1, 0], sizes = [1, 4], strides = [1, 1]} : vector<2x4xf32> to vector<1x4xf32>
    %30 = arith.mulf %28, %28 : vector<1x4xf32>
    %31 = arith.subf %29, %30 : vector<1x4xf32>
    %cst_14 = arith.constant 9.99999974E-6 : f32
    %32 = vector.broadcast %cst_14 : f32 to vector<1x4xf32>
    %33 = arith.addf %31, %32 : vector<1x4xf32>
    %34 = math.rsqrt %33 : vector<1x4xf32>
    %35 = arith.mulf %16, %34 : vector<1x4xf32>
    %36 = arith.mulf %28, %35 : vector<1x4xf32>
    %37 = arith.subf %17, %36 : vector<1x4xf32>
    %38 = tpu.concatenate %35, %37 in 0 : vector<1x4xf32>, vector<1x4xf32> -> vector<2x4xf32>
    %c0_15 = arith.constant 0 : index
    %c0_16 = arith.constant 0 : index
    %39 = vector.load %arg5[%c0_15, %c0_16] : memref<4x128xf32, #tpu.memory_space<vmem>>, vector<4x128xf32>
    %cst_17 = arith.constant dense<0.000000e+00> : vector<2x128xf32>
    %40 = tpu.matmul %38, %39, %cst_17 {dimension_numbers = #tpu.dot_dimension_numbers<[1], [0], [0], [1], [0, 0, 1, 1], [], []>} : vector<2x4xf32>, vector<4x128xf32>, vector<2x128xf32> -> vector<2x128xf32>
    %41 = vector.extract_strided_slice %40 {offsets = [0, 0], sizes = [1, 128], strides = [1, 1]} : vector<2x128xf32> to vector<1x128xf32>
    %42 = vector.broadcast %41 : vector<1x128xf32> to vector<16x128xf32>
    %43 = arith.mulf %15, %42 : vector<16x128xf32>
    %44 = vector.extract_strided_slice %40 {offsets = [1, 0], sizes = [1, 128], strides = [1, 1]} : vector<2x128xf32> to vector<1x128xf32>
    %45 = vector.broadcast %44 : vector<1x128xf32> to vector<16x128xf32>
    %46 = arith.addf %43, %45 : vector<16x128xf32>
    %cst_18 = arith.constant 0.000000e+00 : f32
    %47 = vector.broadcast %cst_18 : f32 to vector<16x128xf32>
    %48 = arith.maximumf %46, %47 : vector<16x128xf32>
    %c0_i32_19 = arith.constant 0 : i32
    %49 = vector.broadcast %c0_i32_19 : i32 to vector<16x128xi32>
    %50 = arith.cmpi eq, %2, %49 : vector<16x128xi32>
    %c1_i32_20 = arith.constant 1 : i32
    %51 = tpu.dynamic_rotate %48 by %c1_i32_20 dim 0 : vector<16x128xf32>, i32 -> vector<16x128xf32>
    %cst_21 = arith.constant 0.000000e+00 : f32
    %52 = vector.broadcast %cst_21 : f32 to vector<16x128xf32>
    %53 = arith.select %50, %52, %51 : vector<16x128xi1>, vector<16x128xf32>
    %c15_i32_22 = arith.constant 15 : i32
    %54 = vector.broadcast %c15_i32_22 : i32 to vector<16x128xi32>
    %55 = arith.cmpi eq, %2, %54 : vector<16x128xi32>
    %c15_i32_23 = arith.constant 15 : i32
    %56 = tpu.dynamic_rotate %48 by %c15_i32_23 dim 0 : vector<16x128xf32>, i32 -> vector<16x128xf32>
    %cst_24 = arith.constant 0.000000e+00 : f32
    %57 = vector.broadcast %cst_24 : f32 to vector<16x128xf32>
    %58 = arith.select %55, %57, %56 : vector<16x128xi1>, vector<16x128xf32>
    %59 = tpu.concatenate %53, %48, %58 in 1 : vector<16x128xf32>, vector<16x128xf32>, vector<16x128xf32> -> vector<16x384xf32>
    %c0_25 = arith.constant 0 : index
    %c0_26 = arith.constant 0 : index
    %60 = vector.load %arg2[%c0_25, %c0_26] : memref<384x128xf32, #tpu.memory_space<vmem>>, vector<384x128xf32>
    %cst_27 = arith.constant dense<0.000000e+00> : vector<16x128xf32>
    %61 = tpu.matmul %59, %60, %cst_27 {dimension_numbers = #tpu.dot_dimension_numbers<[1], [0], [0], [1], [0, 0, 1, 1], [], []>} : vector<16x384xf32>, vector<384x128xf32>, vector<16x128xf32> -> vector<16x128xf32>
    %62 = vector.extract_strided_slice %1 {offsets = [2, 0], sizes = [1, 4], strides = [1, 1]} : vector<4x4xf32> to vector<1x4xf32>
    %63 = vector.extract_strided_slice %1 {offsets = [3, 0], sizes = [1, 4], strides = [1, 1]} : vector<4x4xf32> to vector<1x4xf32>
    %cst_28 = arith.constant dense<0.000000e+00> : vector<128xf32>
    %64 = vector.multi_reduction <add>, %61, %cst_28 [0] : vector<16x128xf32> to vector<128xf32>
    %65 = vector.shape_cast %64 : vector<128xf32> to vector<1x128xf32>
    %66 = arith.mulf %61, %61 : vector<16x128xf32>
    %cst_29 = arith.constant dense<0.000000e+00> : vector<128xf32>
    %67 = vector.multi_reduction <add>, %66, %cst_29 [0] : vector<16x128xf32> to vector<128xf32>
    %68 = vector.shape_cast %67 : vector<128xf32> to vector<1x128xf32>
    %69 = tpu.concatenate %65, %68 in 0 : vector<1x128xf32>, vector<1x128xf32> -> vector<2x128xf32>
    %c0_30 = arith.constant 0 : index
    %c0_31 = arith.constant 0 : index
    %70 = vector.load %arg4[%c0_30, %c0_31] : memref<128x4xf32, #tpu.memory_space<vmem>>, vector<128x4xf32>
    %cst_32 = arith.constant dense<0.000000e+00> : vector<2x4xf32>
    %71 = tpu.matmul %69, %70, %cst_32 {dimension_numbers = #tpu.dot_dimension_numbers<[1], [0], [0], [1], [0, 0, 1, 1], [], []>} : vector<2x128xf32>, vector<128x4xf32>, vector<2x4xf32> -> vector<2x4xf32>
    %cst_33 = arith.constant 0.001953125 : f32
    %72 = vector.broadcast %cst_33 : f32 to vector<2x4xf32>
    %73 = arith.mulf %71, %72 : vector<2x4xf32>
    %74 = vector.extract_strided_slice %73 {offsets = [0, 0], sizes = [1, 4], strides = [1, 1]} : vector<2x4xf32> to vector<1x4xf32>
    %75 = vector.extract_strided_slice %73 {offsets = [1, 0], sizes = [1, 4], strides = [1, 1]} : vector<2x4xf32> to vector<1x4xf32>
    %76 = arith.mulf %74, %74 : vector<1x4xf32>
    %77 = arith.subf %75, %76 : vector<1x4xf32>
    %cst_34 = arith.constant 9.99999974E-6 : f32
    %78 = vector.broadcast %cst_34 : f32 to vector<1x4xf32>
    %79 = arith.addf %77, %78 : vector<1x4xf32>
    %80 = math.rsqrt %79 : vector<1x4xf32>
    %81 = arith.mulf %62, %80 : vector<1x4xf32>
    %82 = arith.mulf %74, %81 : vector<1x4xf32>
    %83 = arith.subf %63, %82 : vector<1x4xf32>
    %84 = tpu.concatenate %81, %83 in 0 : vector<1x4xf32>, vector<1x4xf32> -> vector<2x4xf32>
    %c0_35 = arith.constant 0 : index
    %c0_36 = arith.constant 0 : index
    %85 = vector.load %arg5[%c0_35, %c0_36] : memref<4x128xf32, #tpu.memory_space<vmem>>, vector<4x128xf32>
    %cst_37 = arith.constant dense<0.000000e+00> : vector<2x128xf32>
    %86 = tpu.matmul %84, %85, %cst_37 {dimension_numbers = #tpu.dot_dimension_numbers<[1], [0], [0], [1], [0, 0, 1, 1], [], []>} : vector<2x4xf32>, vector<4x128xf32>, vector<2x128xf32> -> vector<2x128xf32>
    %87 = vector.extract_strided_slice %86 {offsets = [0, 0], sizes = [1, 128], strides = [1, 1]} : vector<2x128xf32> to vector<1x128xf32>
    %88 = vector.broadcast %87 : vector<1x128xf32> to vector<16x128xf32>
    %89 = arith.mulf %61, %88 : vector<16x128xf32>
    %90 = vector.extract_strided_slice %86 {offsets = [1, 0], sizes = [1, 128], strides = [1, 1]} : vector<2x128xf32> to vector<1x128xf32>
    %91 = vector.broadcast %90 : vector<1x128xf32> to vector<16x128xf32>
    %92 = arith.addf %89, %91 : vector<16x128xf32>
    %93 = arith.addf %92, %0 : vector<16x128xf32>
    %cst_38 = arith.constant 0.000000e+00 : f32
    %94 = vector.broadcast %cst_38 : f32 to vector<16x128xf32>
    %95 = arith.maximumf %93, %94 : vector<16x128xf32>
    %c0_39 = arith.constant 0 : index
    %c0_40 = arith.constant 0 : index
    %96 = vector.load %arg6[%c0_39, %c0_40] : memref<16x128xf32, #tpu.memory_space<vmem>>, vector<16x128xf32>
    tpu.vector_store %arg6[%c0_39, %c0_40], %95 {strides = array<i32>} : memref<16x128xf32, #tpu.memory_space<vmem>>, vector<16x128xf32>,
    return
  }
}

</mosaic_0001>

<bundles_post_ra>
// kernel: basic_block_pallas.1
= control target key start
LH: loop header
LB: loop body
LE: loop exit
PB: predicated region body
PF: predicated region fallthrough
CT: control target
= control target key end

     0   :  { %v26_v31 = vlaneseq  ;;  %vm1374_vm4 = vmmov 0   ;;  %vm261_vm5 = vcmask 1040384   ;;  %vm372_vm6 = vcmask 1043456   ;;  %s1908_s1 = inlined_call_operand.vmem [shape: f32[384,128], index: 1, kind: input, shape index: {}]   ;;  %s1909_s0 = inlined_call_operand.vmem [shape: f32[16,128], index: 0, kind: input, shape index: {}]   ;;  %s1910_s4 = inlined_call_operand.vmem [shape: f32[128,4], index: 4, kind: input, shape index: {}]   ;;  %s1911_s5 = inlined_call_operand.vmem [shape: f32[4,128], index: 5, kind: input, shape index: {}]   ;;  %s1912_s2 = inlined_call_operand.vmem [shape: f32[384,128], index: 2, kind: input, shape index: {}]   ;;  %s1913_s3 = inlined_call_operand.vmem [shape: f32[4,4], index: 3, kind: input, shape index: {}]   ;;  %s1914_s6 = inlined_call_operand.vmem [shape: f32[16,128], index: 6, kind: output, shape index: {}]  }
   0x1   :  { %v63_v0 = vld [vmem:[%s1908_s1 + $0x80] sm:$0xff]  ;;  %v64_v1 = vld [vmem:[%s1908_s1 + $0x88] sm:$0xff]  ;;  %v65_v9 = vld [vmem:[%s1908_s1 + $0x90] sm:$0xff]  ;;  %vm368_vm7 = vcmask 31744  }
   0x2   :  { %v47_v2 = vld [vmem:[%s1908_s1] sm:$0xff]  ;;  %v1190_v3 = vpack.c.bf16 %v64_v1, %v63_v0  ;;  %v48_v4 = vld [vmem:[%s1908_s1 + $0x8] sm:$0xff]  ;;  %v66_v10 = vld [vmem:[%s1908_s1 + $0x98] sm:$0xff]  ;;  %v1495_v41 = vshrl.u32 %v26_v31, 7 }
   0x3   :  { %v79_v5 = vld [vmem:[%s1908_s1 + $0x100] sm:$0xff]  ;;  %v80_v6 = vld [vmem:[%s1908_s1 + $0x108] sm:$0xff]  ;;  %v1192_v7 = vpack.c.bf16 %v48_v4, %v47_v2  ;;  %v49_v11 = vld [vmem:[%s1908_s1 + $0x10] sm:$0xff]  ;;  %v1194_v12 = vpack.c.bf16 %v66_v10, %v65_v9 }
   0x4   :  { %v1222_v8 = vpack.c.bf16 %v80_v6, %v79_v5  ;;  %1191 = vmatprep.subr.bf16.mxu0 %v1190_v3  ;;  %v50_v13 = vld [vmem:[%s1908_s1 + $0x18] sm:$0xff]  ;;  %v81_v14 = vld [vmem:[%s1908_s1 + $0x110] sm:$0xff]  ;;  %v67_v18 = vld [vmem:[%s1908_s1 + $0xa0] sm:$0xff]  ;;  %vm42_vm0 = vcmp.lt.s32.totalorder %v1495_v41, 7  ;;  %vm33_vm1 = vcmp.lt.s32.totalorder %v1495_v41, 1  ;;  %vm888_vm2 = vcmp.ne.s32.totalorder %v1495_v41, 0 }
   0x5   :  { %v82_v15 = vld [vmem:[%s1908_s1 + $0x118] sm:$0xff]  ;;  %1193 = vmatpush3.bf16.msra.mxu0 %v1192_v7  ;;  %v1196_v16 = vpack.c.bf16 %v50_v13, %v49_v11  ;;  %v68_v19 = vld [vmem:[%s1908_s1 + $0xa8] sm:$0xff]  ;;  %v51_v20 = vld [vmem:[%s1908_s1 + $0x20] sm:$0xff] }
   0x6   :  { %1223 = vmatprep.subr.bf16.mxu1 %v1222_v8  ;;  %v1226_v17 = vpack.c.bf16 %v82_v15, %v81_v14  ;;  %1195 = vmatprep.subr.bf16.mxu0 %v1194_v12  ;;  %v1198_v21 = vpack.c.bf16 %v68_v19, %v67_v18  ;;  %v52_v22 = vld [vmem:[%s1908_s1 + $0x28] sm:$0xff]  ;;  %v83_v23 = vld [vmem:[%s1908_s1 + $0x120] sm:$0xff]  ;;  %v69_v26 = vld [vmem:[%s1908_s1 + $0xb0] sm:$0xff] }
   0x7   :  { %1225 = vmatpush3.bf16.msra.mxu1 %v1222_v8  ;;  %v84_v24 = vld [vmem:[%s1908_s1 + $0x128] sm:$0xff]  ;;  %v70_v27 = vld [vmem:[%s1908_s1 + $0xb8] sm:$0xff]  ;;  %v85_v28 = vld [vmem:[%s1908_s1 + $0x130] sm:$0xff]  ;;  %v1200_v30 = vpack.c.bf16 %v52_v22, %v51_v20  ;;  %v1373_v22 = vmov 0.0|0.0  }
   0x8   :  { %1227 = vmatprep.subr.bf16.mxu1 %v1226_v17  ;;  %v1230_v25 = vpack.c.bf16 %v84_v24, %v83_v23  ;;  %v86_v29 = vld [vmem:[%s1908_s1 + $0x138] sm:$0xff]  ;;  %v1202_v32 = vpack.c.bf16 %v70_v27, %v69_v26  ;;  %v53_v33 = vld [vmem:[%s1908_s1 + $0x30] sm:$0xff]  ;;  %v71_v36 = vld [vmem:[%s1908_s1 + $0xc0] sm:$0xff] }
   0x9   :  { %1197 = vmatpush3.bf16.msra.mxu0 %v1196_v16  ;;  %v54_v34 = vld [vmem:[%s1908_s1 + $0x38] sm:$0xff]  ;;  %v1234_v35 = vpack.c.bf16 %v86_v29, %v85_v28  ;;  %v72_v37 = vld [vmem:[%s1908_s1 + $0xc8] sm:$0xff]  ;;  %v87_v38 = vld [vmem:[%s1908_s1 + $0x140] sm:$0xff] }
   0xa   :  { %1199 = vmatprep.subr.bf16.mxu0 %v1198_v21  ;;  %v88_v39 = vld [vmem:[%s1908_s1 + $0x148] sm:$0xff]  ;;  %v1204_v40 = vpack.c.bf16 %v54_v34, %v53_v33  ;;  %v1206_v42 = vpack.c.bf16 %v72_v37, %v71_v36  ;;  %v55_v43 = vld [vmem:[%s1908_s1 + $0x40] sm:$0xff]  ;;  %v73_v46 = vld [vmem:[%s1908_s1 + $0xd0] sm:$0xff] }
   0xb   :  { %1229 = vmatpush3.bf16.msra.mxu1 %v1226_v17  ;;  %v56_v44 = vld [vmem:[%s1908_s1 + $0x48] sm:$0xff]  ;;  %v1238_v45 = vpack.c.bf16 %v88_v39, %v87_v38  ;;  %v74_v47 = vld [vmem:[%s1908_s1 + $0xd8] sm:$0xff]  ;;  %v89_v48 = vld [vmem:[%s1908_s1 + $0x150] sm:$0xff]  ;;  %v1577_v17 = vadd.s32 8, %v1495_v41 }
   0xc   :  { %1231 = vmatprep.subr.bf16.mxu1 %v1230_v25  ;;  %v90_v49 = vld [vmem:[%s1908_s1 + $0x158] sm:$0xff]  ;;  %v1208_v50 = vpack.c.bf16 %v56_v44, %v55_v43  ;;  %v1518_v51 = vld [vmem:[%s1909_s0] sm:$0xff]  ;;  %v1523_v52 = vld [vmem:[%s1909_s0 + $0x8] sm:$0xff]  ;;  %v1210_v53 = vpack.c.bf16 %v74_v47, %v73_v46  ;;  %v1375_v46 = vmov 0.0  }
   0xd   :  { %1201 = vmatpush3.bf16.msra.mxu0 %v1200_v30  ;;  %v57_v54 = vld [vmem:[%s1908_s1 + $0x50] sm:$0xff]  ;;  %v58_v55 = vld [vmem:[%s1908_s1 + $0x58] sm:$0xff]  ;;  %v40_v56 = vrot.slane %v1518_v51, 1  ;;  %v41_v57 = vrot.slane %v1523_v52, 1  ;;  %v1242_v58 = vpack.c.bf16 %v90_v49, %v89_v48  ;;  %v75_v59 = vld [vmem:[%s1908_s1 + $0xe0] sm:$0xff]  ;;  %159 = vmatprep.mubr.f32.mxu0 %v1518_v51  ;;  %v31_v15 = vrot.slane %v1518_v51, 7 }
   0xe   :  { %1203 = vmatprep.subr.bf16.mxu0 %v1202_v32  ;;  %v76_v60 = vld [vmem:[%s1908_s1 + $0xe8] sm:$0xff]  ;;  %v91_v61 = vld [vmem:[%s1908_s1 + $0x160] sm:$0xff]  ;;  %v1212_v0 = vpack.c.bf16 %v58_v55, %v57_v54  ;;  %v77_v5 = vld [vmem:[%s1908_s1 + $0xf0] sm:$0xff]  ;;  %v32_v16 = vrot.slane %v1523_v52, 7  ;;  %vm889_vm3 = vcmp.ne.s32.totalorder %v1577_v17, 15 }
   0xf   :  { %1233 = vmatpush3.bf16.msra.mxu1 %v1230_v25  ;;  %v92_v62 = vld [vmem:[%s1908_s1 + $0x168] sm:$0xff]  ;;  %v43_v63 = vsel %vm42_vm0, %v40_v56, %v41_v57  ;;  %v1214_v1 = vpack.c.bf16 %v76_v60, %v75_v59  ;;  %v59_v2 = vld [vmem:[%s1908_s1 + $0x60] sm:$0xff]  ;;  %v78_v6 = vld [vmem:[%s1908_s1 + $0xf8] sm:$0xff]  ;;  %v44_v21 = vsel %vm42_vm0, %v41_v57, %v40_v56 }
  0x10   :  { %1235 = vmatprep.subr.bf16.mxu1 %v1234_v35  ;;  %1072 = vmatprep.mubr.f32.mxu1 %v43_v63  ;;  %v60_v3 = vld [vmem:[%s1908_s1 + $0x68] sm:$0xff]  ;;  %v1246_v4 = vpack.c.bf16 %v92_v62, %v91_v61  ;;  %v93_v7 = vld [vmem:[%s1908_s1 + $0x170] sm:$0xff]  ;;  %v94_v8 = vld [vmem:[%s1908_s1 + $0x178] sm:$0xff]  ;;  %v1218_v10 = vpack.c.bf16 %v78_v6, %v77_v5  ;;  %v35_v20 = vsel %vm33_vm1, %v32_v16, %v31_v15 }
  0x11   :  { %1205 = vmatpush3.bf16.msra.mxu0 %v1204_v40  ;;  %v1216_v9 = vpack.c.bf16 %v60_v3, %v59_v2  ;;  %v61_v11 = vld [vmem:[%s1908_s1 + $0x70] sm:$0xff]  ;;  %v62_v12 = vld [vmem:[%s1908_s1 + $0x78] sm:$0xff]  ;;  %v1250_v13 = vpack.c.bf16 %v94_v8, %v93_v7  ;;  %v263_v18 = vld [vmem:[%s1910_s4] sm:$0xff]  ;;  %v34_v24 = vsel %vm33_vm1, %v31_v15, %v32_v16 }
  0x12   :  { %1207 = vmatprep.subr.bf16.mxu0 %v1206_v42  ;;  %v1220_v14 = vpack.c.bf16 %v62_v12, %v61_v11  ;;  %v264_v19 = vld [vmem:[%s1910_s4 + $0x8] sm:$0xff]  ;;  %v265_v25 = vld [vmem:[%s1910_s4 + $0x10] sm:$0xff]  ;;  %v266_v26 = vld [vmem:[%s1910_s4 + $0x18] sm:$0xff] }
  0x13   :  { %1237 = vmatpush3.bf16.msra.mxu1 %v1234_v35  ;;  %v1592_v23 = vpack.c.bf16 %v264_v19, %v263_v18  ;;  %v1609_v27 = vpack.c.bf16 %v266_v26, %v265_v25  ;;  %v267_v28 = vld [vmem:[%s1910_s4 + $0x20] sm:$0xff]  ;;  %v268_v29 = vld [vmem:[%s1910_s4 + $0x28] sm:$0xff]  ;;  %v269_v31 = vld [vmem:[%s1910_s4 + $0x30] sm:$0xff] }
  0x14   :  { %1239 = vmatprep.subr.bf16.mxu1 %v1238_v45  ;;  %v1619_v30 = vpack.c.bf16 %v268_v29, %v267_v28  ;;  %v270_v32 = vld [vmem:[%s1910_s4 + $0x38] sm:$0xff]  ;;  %v271_v34 = vld [vmem:[%s1910_s4 + $0x40] sm:$0xff]  ;;  %v272_v35 = vld [vmem:[%s1910_s4 + $0x48] sm:$0xff] }
  0x15   :  { %1209 = vmatpush3.bf16.msra.mxu0 %v1208_v50  ;;  %v1629_v33 = vpack.c.bf16 %v270_v32, %v269_v31  ;;  %v1639_v36 = vpack.c.bf16 %v272_v35, %v271_v34  ;;  %v273_v37 = vld [vmem:[%s1910_s4 + $0x50] sm:$0xff]  ;;  %v274_v38 = vld [vmem:[%s1910_s4 + $0x58] sm:$0xff]  ;;  %v275_v40 = vld [vmem:[%s1910_s4 + $0x60] sm:$0xff] }
  0x16   :  { %1211 = vmatprep.subr.bf16.mxu0 %v1210_v53  ;;  %v1649_v39 = vpack.c.bf16 %v274_v38, %v273_v37  ;;  %v276_v42 = vld [vmem:[%s1910_s4 + $0x68] sm:$0xff]  ;;  %v277_v44 = vld [vmem:[%s1910_s4 + $0x70] sm:$0xff]  ;;  %v504_v18 = vld [vmem:[%s1912_s2 + $0x100] sm:$0xff] }
  0x17   :  { %1241 = vmatpush3.bf16.msra.mxu1 %v1238_v45  ;;  %v1659_v43 = vpack.c.bf16 %v276_v42, %v275_v40  ;;  %v278_v45 = vld [vmem:[%s1910_s4 + $0x78] sm:$0xff]  ;;  %v489_v15 = vld [vmem:[%s1912_s2 + $0x88] sm:$0xff]  ;;  %v508_v26 = vld [vmem:[%s1912_s2 + $0x120] sm:$0xff] }
  0x18   :  { %1243 = vmatprep.subr.bf16.mxu1 %v1242_v58  ;;  %v1671_v47 = vpack.c.bf16 %v278_v45, %v277_v44  ;;  %v505_v19 = vld [vmem:[%s1912_s2 + $0x108] sm:$0xff]  ;;  %v510_v31 = vld [vmem:[%s1912_s2 + $0x130] sm:$0xff]  ;;  %v511_v32 = vld [vmem:[%s1912_s2 + $0x138] sm:$0xff] }
  0x19   :  { %1213 = vmatpush3.bf16.msra.mxu0 %v1212_v0  ;;  %v509_v28 = vld [vmem:[%s1912_s2 + $0x128] sm:$0xff]  ;;  %v1322_v34 = vpack.c.bf16 %v511_v32, %v510_v31  ;;  %v512_v35 = vld [vmem:[%s1912_s2 + $0x140] sm:$0xff]  ;;  %v498_v32 = vld [vmem:[%s1912_s2 + $0xd0] sm:$0xff] }
  0x1a   :  { %1215 = vmatprep.subr.bf16.mxu0 %v1214_v1  ;;  %v1318_v29 = vpack.c.bf16 %v509_v28, %v508_v26  ;;  %v513_v37 = vld [vmem:[%s1912_s2 + $0x148] sm:$0xff]  ;;  %v480_v28 = vld [vmem:[%s1912_s2 + $0x40] sm:$0xff] }
  0x1b   :  { %1245 = vmatpush3.bf16.msra.mxu1 %v1242_v58  ;;  %v1326_v38 = vpack.c.bf16 %v513_v37, %v512_v35  ;;  %v482_v37 = vld [vmem:[%s1912_s2 + $0x50] sm:$0xff] }
  0x1c   :  { %1247 = vmatprep.subr.bf16.mxu1 %v1246_v4 }
  0x1d   :  { %1217 = vmatpush3.bf16.msra.mxu0 %v1216_v9 }
  0x1e   :  { %1219 = vmatprep.subr.bf16.mxu0 %v1218_v10 }
  0x1f   :  { %1249 = vmatpush3.bf16.msra.mxu1 %v1246_v4 }
  0x20   :  { %1251 = vmatprep.subr.bf16.mxu1 %v1250_v13 }
  0x21   :  { %1221 = vmatpush3.bf16.msra.mxu0 %v1220_v14  ;;  %v488_v14 = vld [vmem:[%s1912_s2 + $0x80] sm:$0xff] }
  0x22   :  { %1254 = vmatprep.subr.bf16.mxu0 %v1373_v22  ;;  %v1278_v16 = vpack.c.bf16 %v489_v15, %v488_v14  ;;  %v494_v14 = vld [vmem:[%s1912_s2 + $0xb0] sm:$0xff]  ;;  %v495_v15 = vld [vmem:[%s1912_s2 + $0xb8] sm:$0xff] }
  0x23   :  { %1253 = vmatpush3.bf16.msra.mxu1 %v1250_v13  ;;  %v1691_v13 = vld [vmem:[%s1911_s5] sm:$0xf] }
  0x24   :  { %877 = vmatmul.mubr.msk.f32.vlgmr.msra.gmra.mrb[0].mxu0 %vm888_vm2, %v35_v20  ;;  %1110 = vmatprep.subr.mxu1 %v1375_v46  ;;  %v1310_v20 = vpack.c.bf16 %v505_v19, %v504_v18  ;;  %v1290_v18 = vpack.c.bf16 %v495_v15, %v494_v14  ;;  %v478_v19 = vld [vmem:[%s1912_s2 + $0x30] sm:$0xff] }
  0x25   :  { %164 = vmatprep.mubr.f32.mxu0 %v1523_v52  ;;  %1256 = vmatpush3.bf16.msra.mxu0 %v1592_v23 }
  0x26   :  { %1073 = vmatmul.mubr.msk.f32.vlgmr.msra.gmra.mrb[0].mxu1 %vm889_vm3, %v44_v21  ;;  %1257 = vmatprep.subr.bf16.mxu0 %v1373_v22  ;;  %v506_v21 = vld [vmem:[%s1912_s2 + $0x110] sm:$0xff] }
  0x27   :  { %1112 = vmatprep.mubr.msk.f32.mxu1 %vm1374_vm4, %v1375_v46  ;;  %1111 = vmatpush3.msk.msra.mxu1 %vm372_vm6, %v1691_v13 }
  0x28   :  { %165 = vmatmul.mubr.f32.gmra.mrb[2].mxu0 %v34_v24  ;;  %1279 = vmatprep.subr.bf16.mxu1 %v1278_v16  ;;  %v507_v24 = vld [vmem:[%s1912_s2 + $0x118] sm:$0xff] }
  0x29   :  { %1259 = vmatpush3.bf16.msra.mxu0 %v1609_v27  ;;  %1107 = vmatprep.mubr.msk.f32.mxu0 %vm1374_vm4, %v1375_v46  ;;  %v1314_v25 = vpack.c.bf16 %v507_v24, %v506_v21  ;;  %v496_v21 = vld [vmem:[%s1912_s2 + $0xc0] sm:$0xff]  ;;  %v497_v24 = vld [vmem:[%s1912_s2 + $0xc8] sm:$0xff] }
  0x2a   :  { %1260 = vmatprep.subr.bf16.mxu0 %v1373_v22  ;;  %v1294_v26 = vpack.c.bf16 %v497_v24, %v496_v21 }
  0x2d   :  { %1262 = vmatpush3.bf16.msra.mxu0 %v1619_v30 }
  0x2e   :  { %1263 = vmatprep.subr.bf16.mxu0 %v1373_v22 }
  0x31   :  { %1265 = vmatpush3.bf16.msra.mxu0 %v1629_v33 }
  0x32   :  { %1266 = vmatprep.subr.bf16.mxu0 %v1373_v22 }
  0x35   :  { %1268 = vmatpush3.bf16.msra.mxu0 %v1639_v36 }
  0x36   :  { %1269 = vmatprep.subr.bf16.mxu0 %v1373_v22 }
  0x39   :  { %1271 = vmatpush3.bf16.msra.mxu0 %v1649_v39 }
  0x3a   :  { %1272 = vmatprep.subr.bf16.mxu0 %v1373_v22 }
  0x3d   :  { %1274 = vmatpush3.bf16.msra.mxu0 %v1659_v43 }
  0x3e   :  { %1275 = vmatprep.subr.bf16.mxu0 %v1373_v22 }
  0x41   :  { %1277 = vmatpush3.bf16.msra.mxu0 %v1671_v47 }
  0x42   :  { %1311 = vmatprep.subr.bf16.mxu0 %v1310_v20 }
  0xf7   :  { %v922_v48 = vpop.f32.mrb[0].mxu0 }
  0xf8   :  { %v923_v49 = vpop.f32.mrb[1].mxu0 }
  0xf9   :  { %v1074_v50 = vpop.f32.mrb[0].mxu1  ;;  %v924_v53 = vadd.f32 %v923_v49, %v922_v48 }
  0xfa   :  { %v236_v54 = vpop.f32.mrb[1].mxu1 }
  0xfb   :  { %v1677_v55 = vadd.f32 %v924_v53, %v236_v54  ;;  %v925_v56 = vpop.f32.mrb[2].mxu0  ;;  %v1734_v54 = vld [vmem:[%s1913_s3] sm:$0xf] }
  0xfc   :  { %v926_v57 = vpop.f32.mrb[3].mxu0 }
  0xfd   :  { %v927_v58 = vadd.f32 %v926_v57, %v925_v56  ;;  %v252_v60 = vmul.f32 %v1677_v55, %v1677_v55 }
  0xff   :  { %v1679_v59 = vadd.f32 %v1074_v50, %v927_v58 }
 0x101   :  { %v245_v61 = vadd.f32 %v1679_v59, %v1677_v55  ;;  %v253_v62 = vmul.f32 %v1679_v59, %v1679_v59 }
 0x103   :  { %v246_v63 = vrot.slane %v245_v61, 4  ;;  %v254_v0 = vadd.f32 %v253_v62, %v252_v60  ;;  %v472_v60 = vld [vmem:[%s1912_s2] sm:$0xff] }
 0x105   :  { %v247_v1 = vadd.f32 %v246_v63, %v245_v61  ;;  %v255_v2 = vrot.slane %v254_v0, 4  ;;  %v473_v61 = vld [vmem:[%s1912_s2 + $0x8] sm:$0xff]  ;;  %v490_v63 = vld [vmem:[%s1912_s2 + $0x90] sm:$0xff] }
 0x107   :  { %v248_v3 = vrot.slane %v247_v1, 2  ;;  %v256_v4 = vadd.f32 %v255_v2, %v254_v0  ;;  %v491_v0 = vld [vmem:[%s1912_s2 + $0x98] sm:$0xff]  ;;  %v1280_v2 = vpack.c.bf16 %v473_v61, %v472_v60  ;;  %v517_v60 = vld [vmem:[%s1912_s2 + $0x168] sm:$0xff] }
 0x109   :  { %v249_v5 = vadd.f32 %v248_v3, %v247_v1  ;;  %v257_v6 = vrot.slane %v256_v4, 2  ;;  %v1282_v3 = vpack.c.bf16 %v491_v0, %v490_v63  ;;  %v503_v63 = vld [vmem:[%s1912_s2 + $0xf8] sm:$0xff] }
 0x10b   :  { %v250_v7 = vrot.slane %v249_v5, 1  ;;  %v258_v8 = vadd.f32 %v257_v6, %v256_v4  ;;  %v474_v4 = vld [vmem:[%s1912_s2 + $0x10] sm:$0xff] }
 0x10d   :  { %v259_v9 = vrot.slane %v258_v8, 1  ;;  %v251_v10 = vadd.f32 %v250_v7, %v249_v5  ;;  %v475_v5 = vld [vmem:[%s1912_s2 + $0x18] sm:$0xff]  ;;  %v492_v7 = vld [vmem:[%s1912_s2 + $0xa0] sm:$0xff] }
 0x10f   :  { %v260_v11 = vadd.f32 %v259_v9, %v258_v8  ;;  %v493_v8 = vld [vmem:[%s1912_s2 + $0xa8] sm:$0xff]  ;;  %v1284_v9 = vpack.c.bf16 %v475_v5, %v474_v4  ;;  %v519_v5 = vld [vmem:[%s1912_s2 + $0x178] sm:$0xff] }
 0x111   :  { %v262_v12 = vsel %vm261_vm5, %v251_v10, %v260_v11  ;;  %v1286_v10 = vpack.c.bf16 %v493_v8, %v492_v7  ;;  %v476_v11 = vld [vmem:[%s1912_s2 + $0x20] sm:$0xff]  ;;  %v448_v7 = vsub.s32 0, %v1495_v41  ;;  %v454_v8 = vsub.s32 1, %v1495_v41 }
 0x112   :  { %1108 = vmatmul.mubr.f32.vlgmr.msra.gmra.mrb[4].mxu0 %v262_v12  ;;  %v477_v12 = vld [vmem:[%s1912_s2 + $0x28] sm:$0xff] }
 0x113   :  { %1313 = vmatpush3.bf16.msra.mxu0 %v1310_v20  ;;  %v1288_v16 = vpack.c.bf16 %v477_v12, %v476_v11  ;;  %v479_v20 = vld [vmem:[%s1912_s2 + $0x38] sm:$0xff] }
 0x114   :  { %1315 = vmatprep.subr.bf16.mxu0 %v1314_v25 }
 0x117   :  { %1317 = vmatpush3.bf16.msra.mxu0 %v1314_v25  ;;  %v1292_v25 = vpack.c.bf16 %v479_v20, %v478_v19 }
 0x118   :  { %1319 = vmatprep.subr.bf16.mxu0 %v1318_v29 }
 0x11b   :  { %1321 = vmatpush3.bf16.msra.mxu0 %v1318_v29  ;;  %v481_v29 = vld [vmem:[%s1912_s2 + $0x48] sm:$0xff] }
 0x11c   :  { %1323 = vmatprep.subr.bf16.mxu0 %v1322_v34  ;;  %v1296_v31 = vpack.c.bf16 %v481_v29, %v480_v28 }
 0x11f   :  { %1325 = vmatpush3.bf16.msra.mxu0 %v1322_v34  ;;  %v499_v34 = vld [vmem:[%s1912_s2 + $0xd8] sm:$0xff] }
 0x120   :  { %1327 = vmatprep.subr.bf16.mxu0 %v1326_v38  ;;  %v1298_v35 = vpack.c.bf16 %v499_v34, %v498_v32 }
 0x123   :  { %1329 = vmatpush3.bf16.msra.mxu0 %v1326_v38  ;;  %v483_v38 = vld [vmem:[%s1912_s2 + $0x58] sm:$0xff] }
 0x1e5   :  { %v345_v40 = vpop.f32.mrb[4].mxu0 }
 0x1e6   :  { %v349_v42 = vmul.f32 0.001953125, %v345_v40  ;;  %v1109_v44 = vpop.f32.mrb[5].mxu0  ;;  %v514_v40 = vld [vmem:[%s1912_s2 + $0x150] sm:$0xff] }
 0x1e7   :  { %v515_v44 = vld [vmem:[%s1912_s2 + $0x158] sm:$0xff] }
 0x1e8   :  { %v350_v45 = vmul.f32 %v349_v42, %v349_v42 }
 0x1ea   :  { %v352_v48 = vrot.slane %v350_v45, 7  ;;  %v1330_v45 = vpack.c.bf16 %v515_v44, %v514_v40 }
 0x1ec   :  { %v354_v49 = vsub.f32 %v349_v42, %v352_v48  ;;  %v500_v48 = vld [vmem:[%s1912_s2 + $0xe0] sm:$0xff]  ;;  %1331 = vmatprep.subr.bf16.mxu0 %v1330_v45 }
 0x1ed   :  { %1333 = vmatpush3.bf16.msra.mxu0 %v1330_v45 }
 0x1ee   :  { %v355_v50 = vadd.f32 1e-05, %v354_v49  ;;  %v501_v49 = vld [vmem:[%s1912_s2 + $0xe8] sm:$0xff] }
 0x1f0   :  { %1369 = vrsqrt.f32 %v355_v50  ;;  %v1302_v50 = vpack.c.bf16 %v501_v49, %v500_v48 }
 0x1fa   :  { %v1370_v53 = vpop.eup %1369 }
 0x1fb   :  { %v358_v56 = vrot.slane %v1370_v53, 1  ;;  %v484_v53 = vld [vmem:[%s1912_s2 + $0x60] sm:$0xff] }
 0x1fd   :  { %v360_v57 = vmul.f32 %v358_v56, %v1734_v54  ;;  %v485_v56 = vld [vmem:[%s1912_s2 + $0x68] sm:$0xff] }
 0x1ff   :  { %v361_v58 = vmul.f32 %v360_v57, %v349_v42  ;;  %v1300_v42 = vpack.c.bf16 %v483_v38, %v482_v37 }
 0x201   :  { %v363_v62 = vrot.slane %v361_v58, 7  ;;  %v1304_v58 = vpack.c.bf16 %v485_v56, %v484_v53 }
 0x203   :  { %v365_v1 = vsub.f32 %v1734_v54, %v363_v62  ;;  %v502_v62 = vld [vmem:[%s1912_s2 + $0xf0] sm:$0xff] }
 0x204   :  { %v1306_v0 = vpack.c.bf16 %v503_v63, %v502_v62 }
 0x205   :  { %v366_v6 = vsel %vm261_vm5, %v360_v57, %v365_v1  ;;  %v516_v57 = vld [vmem:[%s1912_s2 + $0x160] sm:$0xff]  ;;  %v486_v1 = vld [vmem:[%s1912_s2 + $0x70] sm:$0xff] }
 0x206   :  { %1113 = vmatmul.mubr.msk.f32.vlgmr.msra.gmra.mrb[2].mxu1 %vm368_vm7, %v366_v6  ;;  %v1334_v61 = vpack.c.bf16 %v517_v60, %v516_v57 }
 0x207   :  { %1281 = vmatpush3.bf16.msra.mxu1 %v1280_v2  ;;  %v487_v2 = vld [vmem:[%s1912_s2 + $0x78] sm:$0xff] }
 0x208   :  { %1283 = vmatprep.subr.bf16.mxu1 %v1282_v3  ;;  %1335 = vmatprep.subr.bf16.mxu0 %v1334_v61  ;;  %v518_v3 = vld [vmem:[%s1912_s2 + $0x170] sm:$0xff]  ;;  %v1308_v4 = vpack.c.bf16 %v487_v2, %v486_v1 }
 0x209   :  { %1337 = vmatpush3.bf16.msra.mxu0 %v1334_v61  ;;  %v1338_v6 = vpack.c.bf16 %v519_v5, %v518_v3 }
 0x20b   :  { %1285 = vmatpush3.bf16.msra.mxu1 %v1284_v9  ;;  %1339 = vmatprep.subr.bf16.mxu0 %v1338_v6 }
 0x20c   :  { %1287 = vmatprep.subr.bf16.mxu1 %v1286_v10 }
 0x20d   :  { %1341 = vmatpush3.bf16.msra.mxu0 %v1338_v6 }
 0x20e   :  { %1185 = vmatprep.subr.mxu0 %v1375_v46 }
 0x20f   :  { %1289 = vmatpush3.bf16.msra.mxu1 %v1288_v16 }
 0x210   :  { %1291 = vmatprep.subr.bf16.mxu1 %v1290_v18 }
 0x213   :  { %1293 = vmatpush3.bf16.msra.mxu1 %v1292_v25 }
 0x214   :  { %1295 = vmatprep.subr.bf16.mxu1 %v1294_v26 }
 0x217   :  { %1297 = vmatpush3.bf16.msra.mxu1 %v1296_v31 }
 0x218   :  { %1299 = vmatprep.subr.bf16.mxu1 %v1298_v35 }
 0x21b   :  { %1301 = vmatpush3.bf16.msra.mxu1 %v1300_v42 }
 0x21c   :  { %1303 = vmatprep.subr.bf16.mxu1 %v1302_v50 }
 0x21f   :  { %1305 = vmatpush3.bf16.msra.mxu1 %v1304_v58 }
 0x220   :  { %1307 = vmatprep.subr.bf16.mxu1 %v1306_v0 }
 0x223   :  { %1309 = vmatpush3.bf16.msra.mxu1 %v1308_v4 }
 0x224   :  { %1342 = vmatprep.subr.bf16.mxu1 %v1373_v22 }
 0x2d9   :  { %v442_v9 = vpop.f32.mrb[2].mxu1 }
 0x2da   :  { %v449_v10 = vrot.slane %v442_v9, %v448_v7  ;;  %v1114_v11 = vpop.f32.mrb[3].mxu1  ;;  %v455_v15 = vrot.slane %v442_v9, %v454_v8 }
 0x2dc   :  { %v450_v12 = vmul.f32 %v449_v10, %v1677_v55  ;;  %v451_v14 = vmul.f32 %v449_v10, %v1679_v59 }
 0x2de   :  { %v456_v16 = vadd.f32 %v455_v15, %v450_v12  ;;  %v457_v18 = vadd.f32 %v455_v15, %v451_v14 }
 0x2e0   :  { %v459_v19 = vmax.f32 %v457_v18, 0.0  ;;  %v458_v20 = vmax.f32 %v456_v16, 0.0 }
 0x2e2   :  { %v461_v21 = vrot.slane %v459_v19, 7  ;;  %v460_v24 = vrot.slane %v458_v20, 7  ;;  %584 = vmatprep.mubr.f32.mxu1 %v458_v20  ;;  %v466_v25 = vrot.slane %v458_v20, 1  ;;  %v467_v26 = vrot.slane %v459_v19, 1 }
 0x2e4   :  { %v463_v28 = vsel %vm33_vm1, %v461_v21, %v460_v24  ;;  %v468_v55 = vsel %vm42_vm0, %v466_v25, %v467_v26  ;;  %v469_v59 = vsel %vm42_vm0, %v467_v26, %v466_v25  ;;  %v462_v29 = vsel %vm33_vm1, %v460_v24, %v461_v21 }
 0x2e5   :  { %883 = vmatmul.mubr.msk.f32.vlgmr.msra.gmra.mrb[4].mxu1 %vm888_vm2, %v463_v28  ;;  %1147 = vmatprep.mubr.f32.mxu0 %v468_v55 }
 0x2e6   :  { %589 = vmatprep.mubr.f32.mxu1 %v459_v19  ;;  %1148 = vmatmul.mubr.msk.f32.vlgmr.msra.gmra.mrb[6].mxu0 %vm889_vm3, %v469_v59 }
 0x2e7   :  { %1344 = vmatpush3.bf16.msra.mxu1 %v1592_v23  ;;  %1186 = vmatpush3.msk.msra.mxu0 %vm372_vm6, %v1691_v13 }
 0x2e8   :  { %1345 = vmatprep.subr.bf16.mxu1 %v1373_v22  ;;  %1187 = vmatprep.mubr.msk.f32.mxu0 %vm1374_vm4, %v1375_v46 }
 0x2e9   :  { %590 = vmatmul.mubr.f32.gmra.mrb[6].mxu1 %v462_v29 }
 0x2ea   :  { %1182 = vmatprep.mubr.msk.f32.mxu1 %vm1374_vm4, %v1375_v46 }
 0x2eb   :  { %1347 = vmatpush3.bf16.msra.mxu1 %v1609_v27 }
 0x2ec   :  { %1348 = vmatprep.subr.bf16.mxu1 %v1373_v22 }
 0x2ef   :  { %1350 = vmatpush3.bf16.msra.mxu1 %v1619_v30 }
 0x2f0   :  { %1351 = vmatprep.subr.bf16.mxu1 %v1373_v22 }
 0x2f3   :  { %1353 = vmatpush3.bf16.msra.mxu1 %v1629_v33 }
 0x2f4   :  { %1354 = vmatprep.subr.bf16.mxu1 %v1373_v22 }
 0x2f7   :  { %1356 = vmatpush3.bf16.msra.mxu1 %v1639_v36 }
 0x2f8   :  { %1357 = vmatprep.subr.bf16.mxu1 %v1373_v22 }
 0x2fb   :  { %1359 = vmatpush3.bf16.msra.mxu1 %v1649_v39 }
 0x2fc   :  { %1360 = vmatprep.subr.bf16.mxu1 %v1373_v22 }
 0x2ff   :  { %1362 = vmatpush3.bf16.msra.mxu1 %v1659_v43 }
 0x300   :  { %1363 = vmatprep.subr.bf16.mxu1 %v1373_v22 }
 0x303   :  { %1365 = vmatpush3.bf16.msra.mxu1 %v1671_v47 }
 0x3b8   :  { %v997_v17 = vpop.f32.mrb[4].mxu1 }
 0x3b9   :  { %v998_v23 = vpop.f32.mrb[5].mxu1  ;;  %v1149_v27 = vpop.f32.mrb[6].mxu0 }
 0x3ba   :  { %v999_v30 = vadd.f32 %v998_v23, %v997_v17  ;;  %v661_v33 = vpop.f32.mrb[7].mxu0 }
 0x3bc   :  { %v662_v46 = vadd.f32 %v999_v30, %v661_v33  ;;  %v1000_v13 = vpop.f32.mrb[6].mxu1 }
 0x3bd   :  { %v1001_v36 = vpop.f32.mrb[7].mxu1 }
 0x3be   :  { %v1002_v31 = vadd.f32 %v1001_v36, %v1000_v13  ;;  %v677_v34 = vmul.f32 %v662_v46, %v662_v46 }
 0x3c0   :  { %v667_v32 = vadd.f32 %v1149_v27, %v1002_v31 }
 0x3c2   :  { %v670_v39 = vadd.f32 %v667_v32, %v662_v46  ;;  %v678_v35 = vmul.f32 %v667_v32, %v667_v32 }
 0x3c4   :  { %v671_v37 = vrot.slane %v670_v39, 4  ;;  %v679_v38 = vadd.f32 %v678_v35, %v677_v34 }
 0x3c6   :  { %v672_v43 = vadd.f32 %v671_v37, %v670_v39  ;;  %v680_v40 = vrot.slane %v679_v38, 4 }
 0x3c8   :  { %v673_v22 = vrot.slane %v672_v43, 2  ;;  %v681_v42 = vadd.f32 %v680_v40, %v679_v38 }
 0x3ca   :  { %v674_v47 = vadd.f32 %v673_v22, %v672_v43  ;;  %v682_v44 = vrot.slane %v681_v42, 2 }
 0x3cc   :  { %v675_v45 = vrot.slane %v674_v47, 1  ;;  %v683_v48 = vadd.f32 %v682_v44, %v681_v42 }
 0x3ce   :  { %v684_v49 = vrot.slane %v683_v48, 1  ;;  %v676_v50 = vadd.f32 %v675_v45, %v674_v47 }
 0x3d0   :  { %v685_v53 = vadd.f32 %v684_v49, %v683_v48 }
 0x3d2   :  { %v686_v56 = vsel %vm261_vm5, %v676_v50, %v685_v53 }
 0x3d3   :  { %1183 = vmatmul.mubr.f32.vlgmr.msra.gmra.mrb[8].mxu1 %v686_v56 }
 0x4a6   :  { %v753_v57 = vpop.f32.mrb[8].mxu1 }
 0x4a7   :  { %v757_v58 = vmul.f32 0.001953125, %v753_v57  ;;  %v1184_v60 = vpop.f32.mrb[9].mxu1 }
 0x4a9   :  { %v758_v61 = vmul.f32 %v757_v58, %v757_v58 }
 0x4ab   :  { %v760_v62 = vrot.slane %v758_v61, 7 }
 0x4ad   :  { %v762_v63 = vsub.f32 %v757_v58, %v760_v62 }
 0x4af   :  { %v763_v0 = vadd.f32 1e-05, %v762_v63 }
 0x4b1   :  { %1371 = vrsqrt.f32 %v763_v0 }
 0x4bb   :  { %v1372_v1 = vpop.eup %1371 }
 0x4bc   :  { %v766_v2 = vrot.slane %v1372_v1, 7 }
 0x4be   :  { %v768_v3 = vmul.f32 %v766_v2, %v1734_v54 }
 0x4c0   :  { %v770_v4 = vrot.slane %v768_v3, 2 }
 0x4c2   :  { %v772_v5 = vmul.f32 %v770_v4, %v757_v58 }
 0x4c4   :  { %v774_v6 = vrot.slane %v772_v5, 5 }
 0x4c6   :  { %v776_v9 = vsub.f32 %v1734_v54, %v774_v6 }
 0x4c8   :  { %v778_v10 = vrot.slane %v776_v9, 2 }
 0x4ca   :  { %v780_v11 = vsel %vm261_vm5, %v770_v4, %v778_v10 }
 0x4cb   :  { %1188 = vmatmul.mubr.msk.f32.vlgmr.msra.gmra.mrb[8].mxu0 %vm368_vm7, %v780_v11 }
 0x59e   :  { %v850_v12 = vpop.f32.mrb[8].mxu0 }
 0x59f   :  { %v857_v14 = vrot.slane %v850_v12, %v448_v7  ;;  %v1189_v15 = vpop.f32.mrb[9].mxu0  ;;  %v863_v19 = vrot.slane %v850_v12, %v454_v8 }
 0x5a1   :  { %v858_v16 = vmul.f32 %v857_v14, %v662_v46  ;;  %v859_v18 = vmul.f32 %v857_v14, %v667_v32 }
 0x5a3   :  { %v864_v20 = vadd.f32 %v863_v19, %v858_v16  ;;  %v865_v21 = vadd.f32 %v863_v19, %v859_v18 }
 0x5a5   :  { %v866_v24 = vadd.f32 %v864_v20, %v1518_v51  ;;  %v867_v54 = vadd.f32 %v865_v21, %v1523_v52 }
 0x5a7   :  { %v868_v25 = vmax.f32 %v866_v24, 0.0  ;;  %v869_v26 = vmax.f32 %v867_v54, 0.0 }
 0x5a9   :  { %870 = vst [vmem:[%s1914_s6] sm:$0xff] %v868_v25  ;;  %871 = vst [vmem:[%s1914_s6 + $0x8] sm:$0xff] %v869_v26 }

</bundles_post_ra>
